<compile_context>
chip_gen: v5e
topology: v5e:2x2
jax: 0.10.0
libtpu: 0.0.40
codegen_flags: <defaults>
</compile_context>

<pallas_src>
import jax
import jax.numpy as jnp
from jax.experimental import pallas as pl
from jax.experimental.pallas import tpu as pltpu


def mlp_kernel_t(x_ref, w1_ref, b1_ref, w2_ref, b2_ref, o_ref):
    """Fused lane-dense MLP tile: o = W2 @ relu(W1 @ x + b1) + b2.

    Per-tile shapes:
      x_ref : [d_in, tb]    w1_ref: [H, d_in]    b1_ref: [H, 1]
      o_ref : [d_out, tb]   w2_ref: [d_out, H]   b2_ref: [d_out, 1]
    """
    x = x_ref[...]
    h = jnp.dot(w1_ref[...], x, preferred_element_type=jnp.float32)    # [H, tb]
    h = jnp.maximum(h + b1_ref[...], 0.0)                              # ReLU, f32
    y = jnp.dot(w2_ref[...], h, preferred_element_type=jnp.float32)    # [d_out, tb]
    o_ref[...] = (y + b2_ref[...]).astype(o_ref.dtype)


def _round_up(n, m):
    return ((n + m - 1) // m) * m


def _default_block_b():
    """Generation-specific default batch-tile width (lane columns)."""
    try:
        kind = jax.devices()[0].device_kind.lower()
    except Exception:
        return 16384
    if "v5" in kind:
        return 8192
    if "v7" in kind:
        return 32768
    return 16384  # v6e and unknown


def mlp_forward_t(x_t, w1, b1, w2, b2, *, block_b=None, single_shot_cols=8192):
    """Lane-dense MLP forward.

    x_t: [d_in, B] (batch on the minor/lane axis).
    w1: [H, d_in], b1: [H, 1], w2: [d_out, H], b2: [d_out, 1] (PyTorch-native).
    Returns y_t: [d_out, B].
    """
    d_in, B = x_t.shape
    h_dim = w1.shape[0]
    d_out = w2.shape[0]
    assert w1.shape == (h_dim, d_in)
    assert b1.shape == (h_dim, 1)
    assert w2.shape == (d_out, h_dim)
    assert b2.shape == (d_out, 1)

    if block_b is None:
        block_b = _default_block_b()

    if B <= single_shot_cols:
        # Gridless path: one VMEM-resident tile, no pipeline machinery.
        return pl.pallas_call(
            mlp_kernel_t,
            out_shape=jax.ShapeDtypeStruct((d_out, B), x_t.dtype),
            in_specs=[pl.BlockSpec(memory_space=pltpu.MemorySpace.VMEM)] * 5,
            out_specs=pl.BlockSpec(memory_space=pltpu.MemorySpace.VMEM),
        )(x_t, w1, b1, w2, b2)

    # Batch-tiled path: grid over the lane (batch) axis only.  Weights and
    # biases stay resident in VMEM (index_map always returns (0, 0)).  No
    # input padding / output cropping: the ragged final block is handled by
    # Pallas (OOB reads compute garbage columns that are never committed).
    tb = max(128, min(block_b, _round_up((B + 1) // 2, 128)))  # >=2 tiles for v7x dual-TC
    num_tiles = (B + tb - 1) // tb

    return pl.pallas_call(
        mlp_kernel_t,
        out_shape=jax.ShapeDtypeStruct((d_out, B), x_t.dtype),
        grid_spec=pltpu.PrefetchScalarGridSpec(
            num_scalar_prefetch=0,
            grid=(num_tiles,),
            in_specs=[
                pl.BlockSpec((d_in, tb), lambda i: (0, i)),       # x^T tile (streamed)
                pl.BlockSpec((h_dim, d_in), lambda i: (0, 0)),    # W1 (resident)
                pl.BlockSpec((h_dim, 1), lambda i: (0, 0)),       # b1 (resident)
                pl.BlockSpec((d_out, h_dim), lambda i: (0, 0)),   # W2 (resident)
                pl.BlockSpec((d_out, 1), lambda i: (0, 0)),       # b2 (resident)
            ],
            out_specs=pl.BlockSpec((d_out, tb), lambda i: (0, i)),
        ),
        compiler_params=pltpu.CompilerParams(
            # Independent batch tiles -> shard across TensorCores on v7x.
            dimension_semantics=("parallel",),
            # Headroom under v7x's 64 MiB per-TC VMEM; lane-dense tiles only
            # need a few MiB double-buffered anyway.
            vmem_limit_bytes=48 * 1024 * 1024,
        ),
    )(x_t, w1, b1, w2, b2)


def mlp_forward(x, w1, b1, w2, b2, *, block_b=None, single_shot_cols=8192):
    """Convenience wrapper matching the PyTorch module layout.

    x: [..., d_in] -> y: [..., d_out].  Note: this transposes x/y at the
    boundary (one extra HBM pass each way); callers that can keep the batch on
    the minor axis should use mlp_forward_t directly.
    """
    lead = x.shape[:-1]
    d_in = x.shape[-1]
    x2 = x.reshape(-1, d_in)
    y_t = mlp_forward_t(x2.T, w1, b1, w2, b2,
                        block_b=block_b, single_shot_cols=single_shot_cols)
    return y_t.T.reshape(*lead, -1)


def init_mlp_params(key, input_dim, output_dim, hidden_layers=None):
    """PyTorch-native shapes: W [out, in], b [out, 1]; nn.Linear default init
    (U(-1/sqrt(fan_in), 1/sqrt(fan_in))) using the JAX PRNG."""
    if not hidden_layers:
        hidden_layers = [(input_dim + output_dim) // 2]
    dims = [input_dim] + list(hidden_layers) + [output_dim]
    params = []
    for i in range(len(dims) - 1):
        fan_in, fan_out = dims[i], dims[i + 1]
        key, kw, kb = jax.random.split(key, 3)
        bound = 1.0 / (fan_in ** 0.5)
        w = jax.random.uniform(kw, (fan_out, fan_in), jnp.float32,
                               minval=-bound, maxval=bound)
        b = jax.random.uniform(kb, (fan_out, 1), jnp.float32,
                               minval=-bound, maxval=bound)
        params.append((w, b))
    return params


def _ref_mlp(x, w1, b1, w2, b2):
    """Pure-JAX reference (PyTorch layout: x [B, d_in], W [out, in])."""
    h = jnp.maximum(x @ w1.T + b1.reshape(1, -1), 0.0)
    return h @ w2.T + b2.reshape(1, -1)


# TODO(synk): nn.Dropout only appears in configs with >1 hidden layer and is
# identity in eval mode; training-mode dropout is not implemented here.


if __name__ == "__main__":
    # Default MLP config: input_dim=32, output_dim=16 -> hidden = [(32+16)//2] = [24]
    input_dim, output_dim = 32, 16

    key = jax.random.PRNGKey(0)
    key, kx_small, kx_big = jax.random.split(key, 3)
    (w1, b1), (w2, b2) = init_mlp_params(key, input_dim, output_dim)

    # 1) Small batch through the module-layout convenience wrapper
    #    (gridless single-tile path).
    x_small = jax.random.normal(kx_small, (8, input_dim), jnp.float32)
    y_small = jax.block_until_ready(mlp_forward(x_small, w1, b1, w2, b2))
    ref_small = _ref_mlp(x_small, w1, b1, w2, b2)
    assert y_small.shape == (8, output_dim)
    assert jnp.allclose(y_small, ref_small, atol=1e-5, rtol=1e-5)

    # 2) Lane-dense transposed API through the batch-tiled grid path with a
    #    ragged final block (B=1000, tb=384 -> 3 tiles, last one partial).
    #    (Tiny tile only to exercise the grid path in the test; production
    #     defaults are 8k/16k/32k columns per generation.)
    B_big = 1000
    x_big_t = jax.random.normal(kx_big, (input_dim, B_big), jnp.float32)
    y_big_t = jax.block_until_ready(
        mlp_forward_t(x_big_t, w1, b1, w2, b2, block_b=384, single_shot_cols=0))
    ref_big = _ref_mlp(x_big_t.T, w1, b1, w2, b2)
    assert y_big_t.shape == (output_dim, B_big)
    assert jnp.allclose(y_big_t.T, ref_big, atol=1e-4, rtol=1e-4)

    print("KERNEL_OK")
</pallas_src>

<mosaic_0001>
module attributes {stable_mosaic.version = 11 : i64} {
  func.func @mlp_kernel_t(%arg0: memref<32x8xf32, #tpu.memory_space<vmem>>, %arg1: memref<24x32xf32, #tpu.memory_space<vmem>>, %arg2: memref<24x1xf32, #tpu.memory_space<vmem>>, %arg3: memref<16x24xf32, #tpu.memory_space<vmem>>, %arg4: memref<16x1xf32, #tpu.memory_space<vmem>>, %arg5: memref<16x8xf32, #tpu.memory_space<vmem>>) attributes {dimension_semantics = [], scalar_prefetch = 0 : i64, scratch_operands = 0 : i64, tpu.core_type = #tpu.core_type<tc>} {
    %c0 = arith.constant 0 : index
    %c0_0 = arith.constant 0 : index
    %0 = vector.load %arg0[%c0, %c0_0] : memref<32x8xf32, #tpu.memory_space<vmem>>, vector<32x8xf32>
    %c0_1 = arith.constant 0 : index
    %c0_2 = arith.constant 0 : index
    %1 = vector.load %arg1[%c0_1, %c0_2] : memref<24x32xf32, #tpu.memory_space<vmem>>, vector<24x32xf32>
    %cst = arith.constant dense<0.000000e+00> : vector<24x8xf32>
    %2 = tpu.matmul %1, %0, %cst {dimension_numbers = #tpu.dot_dimension_numbers<[1], [0], [0], [1], [0, 0, 1, 1], [], []>} : vector<24x32xf32>, vector<32x8xf32>, vector<24x8xf32> -> vector<24x8xf32>
    %c0_3 = arith.constant 0 : index
    %c0_4 = arith.constant 0 : index
    %3 = vector.load %arg2[%c0_3, %c0_4] : memref<24x1xf32, #tpu.memory_space<vmem>>, vector<24x1xf32>
    %4 = vector.broadcast %3 : vector<24x1xf32> to vector<24x8xf32>
    %5 = arith.addf %2, %4 : vector<24x8xf32>
    %cst_5 = arith.constant 0.000000e+00 : f32
    %6 = vector.broadcast %cst_5 : f32 to vector<24x8xf32>
    %7 = arith.maximumf %5, %6 : vector<24x8xf32>
    %c0_6 = arith.constant 0 : index
    %c0_7 = arith.constant 0 : index
    %8 = vector.load %arg3[%c0_6, %c0_7] : memref<16x24xf32, #tpu.memory_space<vmem>>, vector<16x24xf32>
    %cst_8 = arith.constant dense<0.000000e+00> : vector<16x8xf32>
    %9 = tpu.matmul %8, %7, %cst_8 {dimension_numbers = #tpu.dot_dimension_numbers<[1], [0], [0], [1], [0, 0, 1, 1], [], []>} : vector<16x24xf32>, vector<24x8xf32>, vector<16x8xf32> -> vector<16x8xf32>
    %c0_9 = arith.constant 0 : index
    %c0_10 = arith.constant 0 : index
    %10 = vector.load %arg4[%c0_9, %c0_10] : memref<16x1xf32, #tpu.memory_space<vmem>>, vector<16x1xf32>
    %11 = vector.broadcast %10 : vector<16x1xf32> to vector<16x8xf32>
    %12 = arith.addf %9, %11 : vector<16x8xf32>
    %c0_11 = arith.constant 0 : index
    %c0_12 = arith.constant 0 : index
    %13 = vector.load %arg5[%c0_11, %c0_12] : memref<16x8xf32, #tpu.memory_space<vmem>>, vector<16x8xf32>
    tpu.vector_store %arg5[%c0_11, %c0_12], %12 {strides = array<i32>} : memref<16x8xf32, #tpu.memory_space<vmem>>, vector<16x8xf32>,
    return
  }
}

</mosaic_0001>

<bundles_post_ra>
// kernel: tpu_custom_call.1
= control target key start
LH: loop header
LB: loop body
LE: loop exit
PB: predicated region body
PF: predicated region fallthrough
CT: control target
= control target key end

     0   :  { %v152_v2 = vmov 0   ;;  %vm45_vm0 = vcmask 261120   ;;  %vm98_vm1 = vcmask 195584   ;;  %vm128_vm2 = vcmask 64512   ;;  %s231_s0 = inlined_call_operand.vmem [shape: f32[32,8], index: 0, kind: input, shape index: {}]   ;;  %s232_s2 = inlined_call_operand.vmem [shape: f32[24,1], index: 2, kind: input, shape index: {}]   ;;  %s233_s1 = inlined_call_operand.vmem [shape: f32[24,32], index: 1, kind: input, shape index: {}]   ;;  %s234_s4 = inlined_call_operand.vmem [shape: f32[16,1], index: 4, kind: input, shape index: {}]   ;;  %s235_s3 = inlined_call_operand.vmem [shape: f32[16,24], index: 3, kind: input, shape index: {}]   ;;  %s236_s5 = inlined_call_operand.vmem [shape: f32[16,8], index: 5, kind: output, shape index: {}]  }
   0x1   :  { %v23_v0 = vld [vmem:[%s231_s0 + $0x18] sm:$0xff]  ;;  %v22_v1 = vld [vmem:[%s231_s0 + $0x10] sm:$0xff]  ;;  %149 = vset.pattern.permute.xlu0 %v152_v2  ;;  %150 = vset.pattern.permute.xlu1 %v152_v2  ;;  %v21_v3 = vld [vmem:[%s231_s0 + $0x8] sm:$0xff] }
   0x2   :  { %140 = vmatpush.msra.mxu2 %v23_v0  ;;  %141 = vmatpush.msra.mxu3 %v23_v0  ;;  %v29_v4 = vld [vmem:[%s232_s2 + $0x10] sm:$0xff]  ;;  %v27_v5 = vld [vmem:[%s232_s2] sm:$0xff]  ;;  %v25_v7 = vld [vmem:[%s233_s1 + $0x8] sm:$0xff] }
   0x3   :  { %67 = vmatpush.msra.mxu0 %v23_v0  ;;  %151 = vset.pattern.permute.xlu2 %v152_v2  ;;  %v20_v6 = vld [vmem:[%s231_s0] sm:$0xff]  ;;  %v26_v8 = vld [vmem:[%s233_s1 + $0x10] sm:$0xff]  ;;  %v28_v10 = vld [vmem:[%s232_s2 + $0x8] sm:$0xff] }
   0x4   :  { %142 = vmatpush.msra.mxu2 %v22_v1  ;;  %143 = vmatpush.msra.mxu3 %v22_v1  ;;  %v24_v9 = vld [vmem:[%s233_s1] sm:$0xff]  ;;  %v87_v12 = vld [vmem:[%s234_s4 + $0x8] sm:$0xff] }
   0x5   :  { %42 = vperm.xlu0 %149, %v29_v4   ;;  %68 = vmatpush.msra.mxu0 %v22_v1  ;;  %v86_v11 = vld [vmem:[%s234_s4] sm:$0xff]  ;;  %v85_v26 = vld [vmem:[%s235_s3 + $0x8] sm:$0xff] }
   0x6   :  { %144 = vmatpush.msra.mxu2 %v21_v3  ;;  %145 = vmatpush.msra.mxu3 %v21_v3  ;;  %v84_v25 = vld [vmem:[%s235_s3] sm:$0xff] }
   0x7   :  { %69 = vmatpush.msra.mxu0 %v21_v3  ;;  %32 = vperm.xlu1 %150, %v27_v5  }
   0x8   :  { %146 = vmatpush.msra.mxu2 %v20_v6  ;;  %147 = vmatpush.msra.mxu3 %v20_v6 }
   0x9   :  { %136 = vmatmul.msk.f32.vlgmr.msra.gmra.mxu2 %vm45_vm0, %v25_v7  ;;  %137 = vmatmul.msk.f32.vlgmr.msra.gmra.mxu3 %vm45_vm0, %v26_v8 }
   0xa   :  { %70 = vmatpush.msra.mxu0 %v20_v6  ;;  %95 = vperm.xlu2 %151, %v87_v12  }
   0xb   :  { %135 = vmatmul.msk.f32.vlgmr.msra.gmra.mxu0 %vm45_vm0, %v24_v9 }
   0xd   :  { %37 = vperm.xlu0 %149, %v28_v10  }
   0xf   :  { %90 = vperm.xlu1 %150, %v86_v11  }
  0x64   :  { %v96_v30 = vpop.permute.xlu2 %95 }
  0x77   :  { %v43_v13 = vpop.permute.xlu0 %42 }
  0x79   :  { %v33_v16 = vpop.permute.xlu1 %32 }
  0x7f   :  { %v38_v15 = vpop.permute.xlu0 %37 }
  0x81   :  { %v91_v27 = vpop.permute.xlu1 %90 }
  0x88   :  { %v72_v14 = vpop.f32.mrf.mxu0 }
  0x89   :  { %v73_v20 = vadd.f32 %v72_v14, %v33_v16 }
  0x8b   :  { %v81_v24 = vmax.f32 %v73_v20, 0.0 }
  0x8c   :  { %v75_v17 = vpop.f32.mrf.mxu2  ;;  %v78_v18 = vpop.f32.mrf.mxu3 }
  0x8d   :  { %v76_v19 = vadd.f32 %v75_v17, %v38_v15  ;;  %v79_v21 = vadd.f32 %v78_v18, %v43_v13 }
  0x8f   :  { %v83_v22 = vmax.f32 %v79_v21, 0.0  ;;  %v82_v23 = vmax.f32 %v76_v19, 0.0 }
  0x91   :  { %118 = vmatpush.msra.mxu1 %v83_v22 }
  0x93   :  { %119 = vmatpush.msra.mxu1 %v82_v23 }
  0x95   :  { %120 = vmatpush.msra.mxu1 %v81_v24 }
  0x96   :  { %138 = vmatmul.msk.f32.vlgmr.msra.gmra.mxu1 %vm98_vm1, %v84_v25 }
  0x9e   :  { %139 = vmatmul.msk.f32.gmra.mxu1 %vm98_vm1, %v85_v26 }
 0x113   :  { %v122_v28 = vpop.f32.mrf.mxu1 }
 0x114   :  { %v123_v29 = vadd.f32 %v122_v28, %v91_v27 }
 0x116   :  { %129 = vst.msk [vmem:[%s236_s5] sm:$0xff] %vm128_vm2, %v123_v29 }
 0x11b   :  { %v125_v31 = vpop.f32.mrf.mxu1 }
 0x11c   :  { %v126_v32 = vadd.f32 %v125_v31, %v96_v30 }
 0x11e   :  { %130 = vst.msk [vmem:[%s236_s5 + $0x8] sm:$0xff] %vm128_vm2, %v126_v32 }

</bundles_post_ra>
